<compile_context>
chip_gen: v7x
topology: tpu7x:2x2x1
jax: 0.10.0
libtpu: 0.0.40
codegen_flags: <defaults>
</compile_context>

<pallas_src>
import functools

import jax
import jax.numpy as jnp
from jax import lax
from jax.experimental import pallas as pl
from jax.experimental.pallas import tpu as pltpu

BN_EPS = 1e-5
DILATIONS = (1, 2, 4, 8, 16)
# Distinct input offsets touched by {kernel=3, dilation in DILATIONS} convs.
OFFSETS = tuple(sorted({s * d for d in DILATIONS for s in (-1, 0, 1)}))   # 11 offsets


def _round_up(v, m):
    return -(-v // m) * m


def _dilated_block_kernel(x_ref,      # (Bblk, nIn, Lp)    compute dtype
                          w1_ref,     # (NR, nIn)          compute dtype (BN1 scale folded)
                          b1_ref,     # (NR, 1)  f32       folded BN1 bias/shift
                          wf_ref,     # (nOut, n_off*NR)   compute dtype (BN2 scale folded)
                          bn2s_ref,   # (nOut, 1) f32      BN2 scale (residual path)
                          bn2b_ref,   # (nOut, 1) f32      BN2 shift
                          alpha_ref,  # (2,) f32 in SMEM   PReLU alphas
                          out_ref,    # (Bblk, nOut, Lp)
                          stk_ref,    # scratch (n_off*NR, Bblk*Lp)  compute dtype
                          *, offsets, do_add, true_len):
    Bblk, _, Lp = x_ref.shape
    NR = w1_ref.shape[0]
    cdt = stk_ref.dtype
    a1 = alpha_ref[0]
    a2 = alpha_ref[1]

    lane = lax.broadcasted_iota(jnp.int32, (NR, Lp), 1)

    # ---- per batch: c1 (1x1 conv) + folded BN1 + PReLU, then 11 lane-shifted copies ----
    for b in range(Bblk):
        o1 = jnp.dot(w1_ref[...], x_ref[b], preferred_element_type=jnp.float32)
        o1 = o1 + b1_ref[...]
        o1 = jnp.where(o1 > 0, o1, a1 * o1).astype(cdt)               # (NR, Lp)

        for j, off in enumerate(offsets):
            if off == 0:
                if true_len == Lp:
                    shifted = o1
                else:
                    shifted = jnp.where(lane < true_len, o1, 0.0)
            else:
                # rolled[c, l] == o1[c, (l + off) % Lp]; mask the out-of-sequence lanes.
                rolled = pltpu.roll(o1, shift=(-off) % Lp, axis=1)
                valid = (lane + off >= 0) & (lane + off < true_len)
                shifted = jnp.where(valid, rolled, 0.0)
            # Fully aligned store: rows [j*NR, (j+1)*NR), lanes [b*Lp, (b+1)*Lp).
            stk_ref[j * NR:(j + 1) * NR, b * Lp:(b + 1) * Lp] = shifted

    # ---- ONE fused MXU matmul: all dilations, taps, concat & prefix sums, all batches ----
    acc = jnp.dot(wf_ref[...], stk_ref[...],
                  preferred_element_type=jnp.float32)                 # (nOut, Bblk*Lp), BN2-scaled
    acc = acc + bn2b_ref[...]

    # ---- residual + PReLU + lane-aligned per-batch store ----
    for b in range(Bblk):
        seg = acc[:, b * Lp:(b + 1) * Lp]
        if do_add:
            seg = seg + bn2s_ref[...] * x_ref[b].astype(jnp.float32)  # residual scaled by BN2
        out_ref[b] = jnp.where(seg > 0, seg, a2 * seg).astype(out_ref.dtype)


def dilated_block_forward(x_ncl, p, *, compute_dtype=jnp.float32, out_dtype=None,
                          batch_block=2):
    """x_ncl: (B, nIn, L) float (PyTorch NCL) -> (B, nOut, L)."""
    B, nIn, L = x_ncl.shape
    nOut = p["bn2_gamma"].shape[0]
    n = p["w_c1"].shape[0]
    n1 = p["wd1"].shape[0]
    do_add = (nIn == nOut)
    out_dtype = x_ncl.dtype if out_dtype is None else out_dtype

    # ---- pad to lane-dense / full-block shapes ----
    Lp = _round_up(L, 128)
    Bblk = max(1, min(batch_block, B))
    Bp = _round_up(B, Bblk)
    x = x_ncl
    if (Bp, Lp) != (B, L):
        x = jnp.pad(x, ((0, Bp - B), (0, 0), (0, Lp - L)))
    x = x.astype(compute_dtype)

    # ---- fold BatchNorms (inference mode) ----
    bn1s = p["bn1_gamma"] / jnp.sqrt(p["bn1_var"] + BN_EPS)
    bn1b = p["bn1_beta"] - p["bn1_mean"] * bn1s
    bn2s = p["bn2_gamma"] / jnp.sqrt(p["bn2_var"] + BN_EPS)
    bn2b = p["bn2_beta"] - p["bn2_mean"] * bn2s

    # Pad the reduced-channel block to a full sublane group (16 keeps bf16 packing dense).
    grp = 8 if jnp.dtype(compute_dtype).itemsize == 4 else 16
    NR = _round_up(n, grp)
    n_off = len(OFFSETS)
    Kst = n_off * NR

    # c1 with BN1 scale folded; padded rows are exact zeros.
    w1 = p["w_c1"] * bn1s[:, None]                                    # (n, nIn)
    b1 = (p["b_c1"] * bn1s + bn1b)[:, None]                           # (n, 1)
    w1 = jnp.pad(w1, ((0, NR - n), (0, 0))).astype(compute_dtype)     # (NR, nIn)
    b1 = jnp.pad(b1, ((0, NR - n), (0, 0))).astype(jnp.float32)       # (NR, 1)

    # Fused dilated weight (nOut, n_off, n).  Output rows:
    #   [0, n1)               <- d1
    #   [n1+k*n, n1+(k+1)*n)  <- prefix sums add1..add4  (k = 0..3)
    oidx = {o: j for j, o in enumerate(OFFSETS)}
    wf = jnp.zeros((nOut, n_off, n), jnp.float32)
    for t, o in enumerate((-1, 0, 1)):
        wf = wf.at[0:n1, oidx[o], :].add(p["wd1"][:, :, t])
    prefix = [(p["wd2"], 2), (p["wd4"], 4), (p["wd8"], 8), (p["wd16"], 16)]
    for bi, (w, d) in enumerate(prefix):
        for k in range(bi, 4):
            r0 = n1 + k * n
            for t, o in enumerate((-d, 0, d)):
                wf = wf.at[r0:r0 + n, oidx[o], :].add(w[:, :, t])
    wf = wf * bn2s[:, None, None]                                     # fold BN2 scale
    wf = jnp.pad(wf, ((0, 0), (0, 0), (0, NR - n)))                   # (nOut, n_off, NR)
    wf = wf.reshape(nOut, Kst).astype(compute_dtype)                  # K index = j*NR + c

    bn2s_c = bn2s.astype(jnp.float32)[:, None]                        # (nOut, 1)
    bn2b_c = bn2b.astype(jnp.float32)[:, None]                        # (nOut, 1)
    alphas = jnp.stack([p["a1"], p["a2"]]).astype(jnp.float32)        # (2,) -> SMEM

    kernel = functools.partial(_dilated_block_kernel, offsets=OFFSETS,
                               do_add=do_add, true_len=L)

    out = pl.pallas_call(
        kernel,
        out_shape=jax.ShapeDtypeStruct((Bp, nOut, Lp), out_dtype),
        grid_spec=pltpu.PrefetchScalarGridSpec(
            num_scalar_prefetch=0,
            grid=(Bp // Bblk,),
            in_specs=[
                pl.BlockSpec((Bblk, nIn, Lp), lambda g: (g, 0, 0)),   # x (lane-dense on L)
                pl.BlockSpec((NR, nIn), lambda g: (0, 0)),            # w1 (BN1 folded)
                pl.BlockSpec((NR, 1), lambda g: (0, 0)),              # b1
                pl.BlockSpec((nOut, Kst), lambda g: (0, 0)),          # fused dilated weight
                pl.BlockSpec((nOut, 1), lambda g: (0, 0)),            # bn2 scale
                pl.BlockSpec((nOut, 1), lambda g: (0, 0)),            # bn2 shift
                pl.BlockSpec(memory_space=pltpu.MemorySpace.SMEM),    # PReLU alphas
            ],
            out_specs=pl.BlockSpec((Bblk, nOut, Lp), lambda g: (g, 0, 0)),
            scratch_shapes=[pltpu.VMEM((Kst, Bblk * Lp), compute_dtype)],
        ),
        compiler_params=pltpu.CompilerParams(
            dimension_semantics=("parallel",),
            # Explicit scoped-VMEM ceiling; 48 MiB is safe on v7x's 64 MiB physical VMEM.
            vmem_limit_bytes=48 * 1024 * 1024,
        ),
    )(x, w1, b1, wf, bn2s_c, bn2b_c, alphas)

    return out[:B, :, :L]                                             # (B, nOut, L), NCL


# ----------------------------- pure-JAX reference -----------------------------
def reference_forward(x, p):
    nOut = p["bn2_gamma"].shape[0]
    nIn = x.shape[1]

    o1 = jnp.einsum("oc,bcl->bol", p["w_c1"], x) + p["b_c1"][None, :, None]

    def bn(v, gamma, beta, mean, var):
        return ((v - mean[None, :, None]) / jnp.sqrt(var[None, :, None] + BN_EPS)
                * gamma[None, :, None] + beta[None, :, None])

    o1 = bn(o1, p["bn1_gamma"], p["bn1_beta"], p["bn1_mean"], p["bn1_var"])
    o1 = jnp.where(o1 > 0, o1, p["a1"] * o1)

    def dconv(w, d):
        return lax.conv_general_dilated(
            o1, w, window_strides=(1,), padding=[(d, d)], rhs_dilation=(d,),
            dimension_numbers=("NCH", "OIH", "NCH"))

    d1, d2, d4 = dconv(p["wd1"], 1), dconv(p["wd2"], 2), dconv(p["wd4"], 4)
    d8, d16 = dconv(p["wd8"], 8), dconv(p["wd16"], 16)
    add1 = d2
    add2 = add1 + d4
    add3 = add2 + d8
    add4 = add3 + d16
    combine = jnp.concatenate([d1, add1, add2, add3, add4], axis=1)
    if nIn == nOut:
        combine = x + combine
    out = bn(combine, p["bn2_gamma"], p["bn2_beta"], p["bn2_mean"], p["bn2_var"])
    out = jnp.where(out > 0, out, p["a2"] * out)
    return out


# ----------------------------- deterministic params -----------------------------
def make_params(nIn, nOut, key):
    n = nOut // 5
    n1 = nOut - 4 * n
    ks = jax.random.split(key, 20)
    f32 = jnp.float32

    def w(k, shape, s=0.1):
        return (s * jax.random.normal(k, shape)).astype(f32)

    p = dict(
        w_c1=w(ks[0], (n, nIn)), b_c1=w(ks[1], (n,)),
        bn1_gamma=jax.random.uniform(ks[2], (n,), minval=0.8, maxval=1.2).astype(f32),
        bn1_beta=w(ks[3], (n,)),
        bn1_mean=w(ks[4], (n,)),
        bn1_var=jax.random.uniform(ks[5], (n,), minval=0.5, maxval=1.5).astype(f32),
        a1=jnp.array(0.25, f32),
        wd1=w(ks[6], (n1, n, 3)), wd2=w(ks[7], (n, n, 3)), wd4=w(ks[8], (n, n, 3)),
        wd8=w(ks[9], (n, n, 3)), wd16=w(ks[10], (n, n, 3)),
        bn2_gamma=jax.random.uniform(ks[11], (nOut,), minval=0.8, maxval=1.2).astype(f32),
        bn2_beta=w(ks[12], (nOut,)),
        bn2_mean=w(ks[13], (nOut,)),
        bn2_var=jax.random.uniform(ks[14], (nOut,), minval=0.5, maxval=1.5).astype(f32),
        a2=jnp.array(0.25, f32),
    )
    return p


if __name__ == "__main__":
    # nIn == nOut -> residual add enabled; n = 4, n1 = 4.
    # B=4 with batch_block=2: each grid step streams 2*128 lanes through the fused MXU dot,
    # and the parallel grid still has 2 steps so both v7x TensorCores get work.
    B, nIn, nOut, L = 4, 20, 20, 128
    key = jax.random.PRNGKey(0)
    k_x, k_p = jax.random.split(key)
    x = jax.random.normal(k_x, (B, nIn, L), dtype=jnp.float32)   # PyTorch NCL layout
    params = make_params(nIn, nOut, k_p)

    ref = jax.block_until_ready(reference_forward(x, params))

    # f32 path: strict check against the pure-JAX reference.
    out = jax.block_until_ready(dilated_block_forward(x, params, batch_block=2))
    assert out.shape == (B, nOut, L) and out.dtype == jnp.float32
    err = float(jnp.max(jnp.abs(out - ref)))
    assert jnp.allclose(out, ref, atol=1e-4, rtol=1e-4), err

    # bf16 MXU path (v6e/v7x-native, halves HBM/scratch bytes): deliberately loose tolerance.
    out_bf16 = jax.block_until_ready(
        dilated_block_forward(x, params, compute_dtype=jnp.bfloat16,
                              out_dtype=jnp.bfloat16, batch_block=2))
    assert out_bf16.shape == (B, nOut, L) and out_bf16.dtype == jnp.bfloat16
    err_bf16 = float(jnp.max(jnp.abs(out_bf16.astype(jnp.float32) - ref)))
    assert jnp.allclose(out_bf16.astype(jnp.float32), ref, atol=1e-1, rtol=1e-1), err_bf16

    print("KERNEL_OK")
</pallas_src>

<mosaic_0001>
module attributes {stable_mosaic.version = 11 : i64} {
  func.func @_dilated_block_kernel(%arg0: i32, %arg1: memref<2x20x128xf32, #tpu.memory_space<vmem>>, %arg2: memref<8x20xf32, #tpu.memory_space<vmem>>, %arg3: memref<8x1xf32, #tpu.memory_space<vmem>>, %arg4: memref<20x88xf32, #tpu.memory_space<vmem>>, %arg5: memref<20x1xf32, #tpu.memory_space<vmem>>, %arg6: memref<20x1xf32, #tpu.memory_space<vmem>>, %arg7: memref<2xf32, #tpu.memory_space<smem>>, %arg8: memref<2x20x128xf32, #tpu.memory_space<vmem>>, %arg9: memref<88x256xf32, #tpu.memory_space<vmem>>) attributes {dimension_semantics = [#tpu.dimension_semantics<parallel>], iteration_bounds = array<i64: 2>, scalar_prefetch = 0 : i64, scratch_operands = 1 : i64, tpu.core_type = #tpu.core_type<tc>, window_params = [{transform_indices = @transform_0, window_bounds = array<i64: 2, 20, 128>}, {pipeline_mode = #tpu.pipeline_mode<synchronous>, transform_indices = @transform_1, window_bounds = array<i64: 8, 20>}, {pipeline_mode = #tpu.pipeline_mode<synchronous>, transform_indices = @transform_2, window_bounds = array<i64: 8, 1>}, {pipeline_mode = #tpu.pipeline_mode<synchronous>, transform_indices = @transform_3, window_bounds = array<i64: 20, 88>}, {pipeline_mode = #tpu.pipeline_mode<synchronous>, transform_indices = @transform_4, window_bounds = array<i64: 20, 1>}, {pipeline_mode = #tpu.pipeline_mode<synchronous>, transform_indices = @transform_5, window_bounds = array<i64: 20, 1>}, {transform_indices = @transform_6, window_bounds = array<i64: 2>}, {transform_indices = @transform_7, window_bounds = array<i64: 2, 20, 128>}]} {
    %c0 = arith.constant 0 : index
    %0 = memref.load %arg7[%c0] : memref<2xf32, #tpu.memory_space<smem>>
    %c1 = arith.constant 1 : index
    %1 = memref.load %arg7[%c1] : memref<2xf32, #tpu.memory_space<smem>>
    %2 = tpu.iota {dimensions = array<i32: 1>} : vector<8x128xi32>
    %c0_0 = arith.constant 0 : index
    %c0_1 = arith.constant 0 : index
    %3 = vector.load %arg2[%c0_0, %c0_1] : memref<8x20xf32, #tpu.memory_space<vmem>>, vector<8x20xf32>
    %c0_2 = arith.constant 0 : index
    %c0_3 = arith.constant 0 : index
    %c0_4 = arith.constant 0 : index
    %4 = vector.load %arg1[%c0_2, %c0_3, %c0_4] : memref<2x20x128xf32, #tpu.memory_space<vmem>>, vector<1x20x128xf32>
    %5 = vector.shape_cast %4 : vector<1x20x128xf32> to vector<20x128xf32>
    %cst = arith.constant dense<0.000000e+00> : vector<8x128xf32>
    %6 = tpu.matmul %3, %5, %cst {dimension_numbers = #tpu.dot_dimension_numbers<[1], [0], [0], [1], [0, 0, 1, 1], [], []>} : vector<8x20xf32>, vector<20x128xf32>, vector<8x128xf32> -> vector<8x128xf32>
    %c0_5 = arith.constant 0 : index
    %c0_6 = arith.constant 0 : index
    %7 = vector.load %arg3[%c0_5, %c0_6] : memref<8x1xf32, #tpu.memory_space<vmem>>, vector<8x1xf32>
    %8 = vector.broadcast %7 : vector<8x1xf32> to vector<8x128xf32>
    %9 = arith.addf %6, %8 : vector<8x128xf32>
    %cst_7 = arith.constant 0.000000e+00 : f32
    %10 = vector.broadcast %cst_7 : f32 to vector<8x128xf32>
    %11 = arith.cmpf ogt, %9, %10 : vector<8x128xf32>
    %12 = vector.broadcast %0 : f32 to vector<8x128xf32>
    %13 = arith.mulf %12, %9 : vector<8x128xf32>
    %14 = arith.select %11, %9, %13 : vector<8x128xi1>, vector<8x128xf32>
    %c16_i32 = arith.constant 16 : i32
    %15 = tpu.dynamic_rotate %14 by %c16_i32 dim 1 : vector<8x128xf32>, i32 -> vector<8x128xf32>
    %c-16_i32 = arith.constant -16 : i32
    %16 = vector.broadcast %c-16_i32 : i32 to vector<8x128xi32>
    %17 = arith.addi %2, %16 : vector<8x128xi32>
    %c0_i32 = arith.constant 0 : i32
    %18 = vector.broadcast %c0_i32 : i32 to vector<8x128xi32>
    %19 = arith.cmpi sge, %17, %18 : vector<8x128xi32>
    %c-16_i32_8 = arith.constant -16 : i32
    %20 = vector.broadcast %c-16_i32_8 : i32 to vector<8x128xi32>
    %21 = arith.addi %2, %20 : vector<8x128xi32>
    %c128_i32 = arith.constant 128 : i32
    %22 = vector.broadcast %c128_i32 : i32 to vector<8x128xi32>
    %23 = arith.cmpi slt, %21, %22 : vector<8x128xi32>
    %24 = arith.andi %19, %23 : vector<8x128xi1>
    %cst_9 = arith.constant 0.000000e+00 : f32
    %25 = vector.broadcast %cst_9 : f32 to vector<8x128xf32>
    %26 = arith.select %24, %15, %25 : vector<8x128xi1>, vector<8x128xf32>
    %c0_10 = arith.constant 0 : index
    %c0_11 = arith.constant 0 : index
    %27 = vector.load %arg9[%c0_10, %c0_11] : memref<88x256xf32, #tpu.memory_space<vmem>>, vector<8x128xf32>
    tpu.vector_store %arg9[%c0_10, %c0_11], %26 {strides = array<i32>} : memref<88x256xf32, #tpu.memory_space<vmem>>, vector<8x128xf32>,
    %c8_i32 = arith.constant 8 : i32
    %28 = tpu.dynamic_rotate %14 by %c8_i32 dim 1 : vector<8x128xf32>, i32 -> vector<8x128xf32>
    %c-8_i32 = arith.constant -8 : i32
    %29 = vector.broadcast %c-8_i32 : i32 to vector<8x128xi32>
    %30 = arith.addi %2, %29 : vector<8x128xi32>
    %c0_i32_12 = arith.constant 0 : i32
    %31 = vector.broadcast %c0_i32_12 : i32 to vector<8x128xi32>
    %32 = arith.cmpi sge, %30, %31 : vector<8x128xi32>
    %c-8_i32_13 = arith.constant -8 : i32
    %33 = vector.broadcast %c-8_i32_13 : i32 to vector<8x128xi32>
    %34 = arith.addi %2, %33 : vector<8x128xi32>
    %c128_i32_14 = arith.constant 128 : i32
    %35 = vector.broadcast %c128_i32_14 : i32 to vector<8x128xi32>
    %36 = arith.cmpi slt, %34, %35 : vector<8x128xi32>
    %37 = arith.andi %32, %36 : vector<8x128xi1>
    %cst_15 = arith.constant 0.000000e+00 : f32
    %38 = vector.broadcast %cst_15 : f32 to vector<8x128xf32>
    %39 = arith.select %37, %28, %38 : vector<8x128xi1>, vector<8x128xf32>
    %c8 = arith.constant 8 : index
    %c0_16 = arith.constant 0 : index
    %40 = vector.load %arg9[%c8, %c0_16] : memref<88x256xf32, #tpu.memory_space<vmem>>, vector<8x128xf32>
    tpu.vector_store %arg9[%c8, %c0_16], %39 {strides = array<i32>} : memref<88x256xf32, #tpu.memory_space<vmem>>, vector<8x128xf32>,
    %c4_i32 = arith.constant 4 : i32
    %41 = tpu.dynamic_rotate %14 by %c4_i32 dim 1 : vector<8x128xf32>, i32 -> vector<8x128xf32>
    %c-4_i32 = arith.constant -4 : i32
    %42 = vector.broadcast %c-4_i32 : i32 to vector<8x128xi32>
    %43 = arith.addi %2, %42 : vector<8x128xi32>
    %c0_i32_17 = arith.constant 0 : i32
    %44 = vector.broadcast %c0_i32_17 : i32 to vector<8x128xi32>
    %45 = arith.cmpi sge, %43, %44 : vector<8x128xi32>
    %c-4_i32_18 = arith.constant -4 : i32
    %46 = vector.broadcast %c-4_i32_18 : i32 to vector<8x128xi32>
    %47 = arith.addi %2, %46 : vector<8x128xi32>
    %c128_i32_19 = arith.constant 128 : i32
    %48 = vector.broadcast %c128_i32_19 : i32 to vector<8x128xi32>
    %49 = arith.cmpi slt, %47, %48 : vector<8x128xi32>
    %50 = arith.andi %45, %49 : vector<8x128xi1>
    %cst_20 = arith.constant 0.000000e+00 : f32
    %51 = vector.broadcast %cst_20 : f32 to vector<8x128xf32>
    %52 = arith.select %50, %41, %51 : vector<8x128xi1>, vector<8x128xf32>
    %c16 = arith.constant 16 : index
    %c0_21 = arith.constant 0 : index
    %53 = vector.load %arg9[%c16, %c0_21] : memref<88x256xf32, #tpu.memory_space<vmem>>, vector<8x128xf32>
    tpu.vector_store %arg9[%c16, %c0_21], %52 {strides = array<i32>} : memref<88x256xf32, #tpu.memory_space<vmem>>, vector<8x128xf32>,
    %c2_i32 = arith.constant 2 : i32
    %54 = tpu.dynamic_rotate %14 by %c2_i32 dim 1 : vector<8x128xf32>, i32 -> vector<8x128xf32>
    %c-2_i32 = arith.constant -2 : i32
    %55 = vector.broadcast %c-2_i32 : i32 to vector<8x128xi32>
    %56 = arith.addi %2, %55 : vector<8x128xi32>
    %c0_i32_22 = arith.constant 0 : i32
    %57 = vector.broadcast %c0_i32_22 : i32 to vector<8x128xi32>
    %58 = arith.cmpi sge, %56, %57 : vector<8x128xi32>
    %c-2_i32_23 = arith.constant -2 : i32
    %59 = vector.broadcast %c-2_i32_23 : i32 to vector<8x128xi32>
    %60 = arith.addi %2, %59 : vector<8x128xi32>
    %c128_i32_24 = arith.constant 128 : i32
    %61 = vector.broadcast %c128_i32_24 : i32 to vector<8x128xi32>
    %62 = arith.cmpi slt, %60, %61 : vector<8x128xi32>
    %63 = arith.andi %58, %62 : vector<8x128xi1>
    %cst_25 = arith.constant 0.000000e+00 : f32
    %64 = vector.broadcast %cst_25 : f32 to vector<8x128xf32>
    %65 = arith.select %63, %54, %64 : vector<8x128xi1>, vector<8x128xf32>
    %c24 = arith.constant 24 : index
    %c0_26 = arith.constant 0 : index
    %66 = vector.load %arg9[%c24, %c0_26] : memref<88x256xf32, #tpu.memory_space<vmem>>, vector<8x128xf32>
    tpu.vector_store %arg9[%c24, %c0_26], %65 {strides = array<i32>} : memref<88x256xf32, #tpu.memory_space<vmem>>, vector<8x128xf32>,
    %c1_i32 = arith.constant 1 : i32
    %67 = tpu.dynamic_rotate %14 by %c1_i32 dim 1 : vector<8x128xf32>, i32 -> vector<8x128xf32>
    %c-1_i32 = arith.constant -1 : i32
    %68 = vector.broadcast %c-1_i32 : i32 to vector<8x128xi32>
    %69 = arith.addi %2, %68 : vector<8x128xi32>
    %c0_i32_27 = arith.constant 0 : i32
    %70 = vector.broadcast %c0_i32_27 : i32 to vector<8x128xi32>
    %71 = arith.cmpi sge, %69, %70 : vector<8x128xi32>
    %c-1_i32_28 = arith.constant -1 : i32
    %72 = vector.broadcast %c-1_i32_28 : i32 to vector<8x128xi32>
    %73 = arith.addi %2, %72 : vector<8x128xi32>
    %c128_i32_29 = arith.constant 128 : i32
    %74 = vector.broadcast %c128_i32_29 : i32 to vector<8x128xi32>
    %75 = arith.cmpi slt, %73, %74 : vector<8x128xi32>
    %76 = arith.andi %71, %75 : vector<8x128xi1>
    %cst_30 = arith.constant 0.000000e+00 : f32
    %77 = vector.broadcast %cst_30 : f32 to vector<8x128xf32>
    %78 = arith.select %76, %67, %77 : vector<8x128xi1>, vector<8x128xf32>
    %c32 = arith.constant 32 : index
    %c0_31 = arith.constant 0 : index
    %79 = vector.load %arg9[%c32, %c0_31] : memref<88x256xf32, #tpu.memory_space<vmem>>, vector<8x128xf32>
    tpu.vector_store %arg9[%c32, %c0_31], %78 {strides = array<i32>} : memref<88x256xf32, #tpu.memory_space<vmem>>, vector<8x128xf32>,
    %c40 = arith.constant 40 : index
    %c0_32 = arith.constant 0 : index
    %80 = vector.load %arg9[%c40, %c0_32] : memref<88x256xf32, #tpu.memory_space<vmem>>, vector<8x128xf32>
    tpu.vector_store %arg9[%c40, %c0_32], %14 {strides = array<i32>} : memref<88x256xf32, #tpu.memory_space<vmem>>, vector<8x128xf32>,
    %c127_i32 = arith.constant 127 : i32
    %81 = tpu.dynamic_rotate %14 by %c127_i32 dim 1 : vector<8x128xf32>, i32 -> vector<8x128xf32>
    %c1_i32_33 = arith.constant 1 : i32
    %82 = vector.broadcast %c1_i32_33 : i32 to vector<8x128xi32>
    %83 = arith.addi %2, %82 : vector<8x128xi32>
    %c0_i32_34 = arith.constant 0 : i32
    %84 = vector.broadcast %c0_i32_34 : i32 to vector<8x128xi32>
    %85 = arith.cmpi sge, %83, %84 : vector<8x128xi32>
    %c1_i32_35 = arith.constant 1 : i32
    %86 = vector.broadcast %c1_i32_35 : i32 to vector<8x128xi32>
    %87 = arith.addi %2, %86 : vector<8x128xi32>
    %c128_i32_36 = arith.constant 128 : i32
    %88 = vector.broadcast %c128_i32_36 : i32 to vector<8x128xi32>
    %89 = arith.cmpi slt, %87, %88 : vector<8x128xi32>
    %90 = arith.andi %85, %89 : vector<8x128xi1>
    %cst_37 = arith.constant 0.000000e+00 : f32
    %91 = vector.broadcast %cst_37 : f32 to vector<8x128xf32>
    %92 = arith.select %90, %81, %91 : vector<8x128xi1>, vector<8x128xf32>
    %c48 = arith.constant 48 : index
    %c0_38 = arith.constant 0 : index
    %93 = vector.load %arg9[%c48, %c0_38] : memref<88x256xf32, #tpu.memory_space<vmem>>, vector<8x128xf32>
    tpu.vector_store %arg9[%c48, %c0_38], %92 {strides = array<i32>} : memref<88x256xf32, #tpu.memory_space<vmem>>, vector<8x128xf32>,
    %c126_i32 = arith.constant 126 : i32
    %94 = tpu.dynamic_rotate %14 by %c126_i32 dim 1 : vector<8x128xf32>, i32 -> vector<8x128xf32>
    %c2_i32_39 = arith.constant 2 : i32
    %95 = vector.broadcast %c2_i32_39 : i32 to vector<8x128xi32>
    %96 = arith.addi %2, %95 : vector<8x128xi32>
    %c0_i32_40 = arith.constant 0 : i32
    %97 = vector.broadcast %c0_i32_40 : i32 to vector<8x128xi32>
    %98 = arith.cmpi sge, %96, %97 : vector<8x128xi32>
    %c2_i32_41 = arith.constant 2 : i32
    %99 = vector.broadcast %c2_i32_41 : i32 to vector<8x128xi32>
    %100 = arith.addi %2, %99 : vector<8x128xi32>
    %c128_i32_42 = arith.constant 128 : i32
    %101 = vector.broadcast %c128_i32_42 : i32 to vector<8x128xi32>
    %102 = arith.cmpi slt, %100, %101 : vector<8x128xi32>
    %103 = arith.andi %98, %102 : vector<8x128xi1>
    %cst_43 = arith.constant 0.000000e+00 : f32
    %104 = vector.broadcast %cst_43 : f32 to vector<8x128xf32>
    %105 = arith.select %103, %94, %104 : vector<8x128xi1>, vector<8x128xf32>
    %c56 = arith.constant 56 : index
    %c0_44 = arith.constant 0 : index
    %106 = vector.load %arg9[%c56, %c0_44] : memref<88x256xf32, #tpu.memory_space<vmem>>, vector<8x128xf32>
    tpu.vector_store %arg9[%c56, %c0_44], %105 {strides = array<i32>} : memref<88x256xf32, #tpu.memory_space<vmem>>, vector<8x128xf32>,
    %c124_i32 = arith.constant 124 : i32
    %107 = tpu.dynamic_rotate %14 by %c124_i32 dim 1 : vector<8x128xf32>, i32 -> vector<8x128xf32>
    %c4_i32_45 = arith.constant 4 : i32
    %108 = vector.broadcast %c4_i32_45 : i32 to vector<8x128xi32>
    %109 = arith.addi %2, %108 : vector<8x128xi32>
    %c0_i32_46 = arith.constant 0 : i32
    %110 = vector.broadcast %c0_i32_46 : i32 to vector<8x128xi32>
    %111 = arith.cmpi sge, %109, %110 : vector<8x128xi32>
    %c4_i32_47 = arith.constant 4 : i32
    %112 = vector.broadcast %c4_i32_47 : i32 to vector<8x128xi32>
    %113 = arith.addi %2, %112 : vector<8x128xi32>
    %c128_i32_48 = arith.constant 128 : i32
    %114 = vector.broadcast %c128_i32_48 : i32 to vector<8x128xi32>
    %115 = arith.cmpi slt, %113, %114 : vector<8x128xi32>
    %116 = arith.andi %111, %115 : vector<8x128xi1>
    %cst_49 = arith.constant 0.000000e+00 : f32
    %117 = vector.broadcast %cst_49 : f32 to vector<8x128xf32>
    %118 = arith.select %116, %107, %117 : vector<8x128xi1>, vector<8x128xf32>
    %c64 = arith.constant 64 : index
    %c0_50 = arith.constant 0 : index
    %119 = vector.load %arg9[%c64, %c0_50] : memref<88x256xf32, #tpu.memory_space<vmem>>, vector<8x128xf32>
    tpu.vector_store %arg9[%c64, %c0_50], %118 {strides = array<i32>} : memref<88x256xf32, #tpu.memory_space<vmem>>, vector<8x128xf32>,
    %c120_i32 = arith.constant 120 : i32
    %120 = tpu.dynamic_rotate %14 by %c120_i32 dim 1 : vector<8x128xf32>, i32 -> vector<8x128xf32>
    %c8_i32_51 = arith.constant 8 : i32
    %121 = vector.broadcast %c8_i32_51 : i32 to vector<8x128xi32>
    %122 = arith.addi %2, %121 : vector<8x128xi32>
    %c0_i32_52 = arith.constant 0 : i32
    %123 = vector.broadcast %c0_i32_52 : i32 to vector<8x128xi32>
    %124 = arith.cmpi sge, %122, %123 : vector<8x128xi32>
    %c8_i32_53 = arith.constant 8 : i32
    %125 = vector.broadcast %c8_i32_53 : i32 to vector<8x128xi32>
    %126 = arith.addi %2, %125 : vector<8x128xi32>
    %c128_i32_54 = arith.constant 128 : i32
    %127 = vector.broadcast %c128_i32_54 : i32 to vector<8x128xi32>
    %128 = arith.cmpi slt, %126, %127 : vector<8x128xi32>
    %129 = arith.andi %124, %128 : vector<8x128xi1>
    %cst_55 = arith.constant 0.000000e+00 : f32
    %130 = vector.broadcast %cst_55 : f32 to vector<8x128xf32>
    %131 = arith.select %129, %120, %130 : vector<8x128xi1>, vector<8x128xf32>
    %c72 = arith.constant 72 : index
    %c0_56 = arith.constant 0 : index
    %132 = vector.load %arg9[%c72, %c0_56] : memref<88x256xf32, #tpu.memory_space<vmem>>, vector<8x128xf32>
    tpu.vector_store %arg9[%c72, %c0_56], %131 {strides = array<i32>} : memref<88x256xf32, #tpu.memory_space<vmem>>, vector<8x128xf32>,
    %c112_i32 = arith.constant 112 : i32
    %133 = tpu.dynamic_rotate %14 by %c112_i32 dim 1 : vector<8x128xf32>, i32 -> vector<8x128xf32>
    %c16_i32_57 = arith.constant 16 : i32
    %134 = vector.broadcast %c16_i32_57 : i32 to vector<8x128xi32>
    %135 = arith.addi %2, %134 : vector<8x128xi32>
    %c0_i32_58 = arith.constant 0 : i32
    %136 = vector.broadcast %c0_i32_58 : i32 to vector<8x128xi32>
    %137 = arith.cmpi sge, %135, %136 : vector<8x128xi32>
    %c16_i32_59 = arith.constant 16 : i32
    %138 = vector.broadcast %c16_i32_59 : i32 to vector<8x128xi32>
    %139 = arith.addi %2, %138 : vector<8x128xi32>
    %c128_i32_60 = arith.constant 128 : i32
    %140 = vector.broadcast %c128_i32_60 : i32 to vector<8x128xi32>
    %141 = arith.cmpi slt, %139, %140 : vector<8x128xi32>
    %142 = arith.andi %137, %141 : vector<8x128xi1>
    %cst_61 = arith.constant 0.000000e+00 : f32
    %143 = vector.broadcast %cst_61 : f32 to vector<8x128xf32>
    %144 = arith.select %142, %133, %143 : vector<8x128xi1>, vector<8x128xf32>
    %c80 = arith.constant 80 : index
    %c0_62 = arith.constant 0 : index
    %145 = vector.load %arg9[%c80, %c0_62] : memref<88x256xf32, #tpu.memory_space<vmem>>, vector<8x128xf32>
    tpu.vector_store %arg9[%c80, %c0_62], %144 {strides = array<i32>} : memref<88x256xf32, #tpu.memory_space<vmem>>, vector<8x128xf32>,
    %c0_63 = arith.constant 0 : index
    %c0_64 = arith.constant 0 : index
    %146 = vector.load %arg2[%c0_63, %c0_64] : memref<8x20xf32, #tpu.memory_space<vmem>>, vector<8x20xf32>
    %c1_65 = arith.constant 1 : index
    %c0_66 = arith.constant 0 : index
    %c0_67 = arith.constant 0 : index
    %147 = vector.load %arg1[%c1_65, %c0_66, %c0_67] : memref<2x20x128xf32, #tpu.memory_space<vmem>>, vector<1x20x128xf32>
    %148 = vector.shape_cast %147 : vector<1x20x128xf32> to vector<20x128xf32>
    %cst_68 = arith.constant dense<0.000000e+00> : vector<8x128xf32>
    %149 = tpu.matmul %146, %148, %cst_68 {dimension_numbers = #tpu.dot_dimension_numbers<[1], [0], [0], [1], [0, 0, 1, 1], [], []>} : vector<8x20xf32>, vector<20x128xf32>, vector<8x128xf32> -> vector<8x128xf32>
    %c0_69 = arith.constant 0 : index
    %c0_70 = arith.constant 0 : index
    %150 = vector.load %arg3[%c0_69, %c0_70] : memref<8x1xf32, #tpu.memory_space<vmem>>, vector<8x1xf32>
    %151 = vector.broadcast %150 : vector<8x1xf32> to vector<8x128xf32>
    %152 = arith.addf %149, %151 : vector<8x128xf32>
    %cst_71 = arith.constant 0.000000e+00 : f32
    %153 = vector.broadcast %cst_71 : f32 to vector<8x128xf32>
    %154 = arith.cmpf ogt, %152, %153 : vector<8x128xf32>
    %155 = vector.broadcast %0 : f32 to vector<8x128xf32>
    %156 = arith.mulf %155, %152 : vector<8x128xf32>
    %157 = arith.select %154, %152, %156 : vector<8x128xi1>, vector<8x128xf32>
    %c16_i32_72 = arith.constant 16 : i32
    %158 = tpu.dynamic_rotate %157 by %c16_i32_72 dim 1 : vector<8x128xf32>, i32 -> vector<8x128xf32>
    %c-16_i32_73 = arith.constant -16 : i32
    %159 = vector.broadcast %c-16_i32_73 : i32 to vector<8x128xi32>
    %160 = arith.addi %2, %159 : vector<8x128xi32>
    %c0_i32_74 = arith.constant 0 : i32
    %161 = vector.broadcast %c0_i32_74 : i32 to vector<8x128xi32>
    %162 = arith.cmpi sge, %160, %161 : vector<8x128xi32>
    %c-16_i32_75 = arith.constant -16 : i32
    %163 = vector.broadcast %c-16_i32_75 : i32 to vector<8x128xi32>
    %164 = arith.addi %2, %163 : vector<8x128xi32>
    %c128_i32_76 = arith.constant 128 : i32
    %165 = vector.broadcast %c128_i32_76 : i32 to vector<8x128xi32>
    %166 = arith.cmpi slt, %164, %165 : vector<8x128xi32>
    %167 = arith.andi %162, %166 : vector<8x128xi1>
    %cst_77 = arith.constant 0.000000e+00 : f32
    %168 = vector.broadcast %cst_77 : f32 to vector<8x128xf32>
    %169 = arith.select %167, %158, %168 : vector<8x128xi1>, vector<8x128xf32>
    %c0_78 = arith.constant 0 : index
    %c128 = arith.constant 128 : index
    %170 = vector.load %arg9[%c0_78, %c128] : memref<88x256xf32, #tpu.memory_space<vmem>>, vector<8x128xf32>
    tpu.vector_store %arg9[%c0_78, %c128], %169 {strides = array<i32>} : memref<88x256xf32, #tpu.memory_space<vmem>>, vector<8x128xf32>,
    %c8_i32_79 = arith.constant 8 : i32
    %171 = tpu.dynamic_rotate %157 by %c8_i32_79 dim 1 : vector<8x128xf32>, i32 -> vector<8x128xf32>
    %c-8_i32_80 = arith.constant -8 : i32
    %172 = vector.broadcast %c-8_i32_80 : i32 to vector<8x128xi32>
    %173 = arith.addi %2, %172 : vector<8x128xi32>
    %c0_i32_81 = arith.constant 0 : i32
    %174 = vector.broadcast %c0_i32_81 : i32 to vector<8x128xi32>
    %175 = arith.cmpi sge, %173, %174 : vector<8x128xi32>
    %c-8_i32_82 = arith.constant -8 : i32
    %176 = vector.broadcast %c-8_i32_82 : i32 to vector<8x128xi32>
    %177 = arith.addi %2, %176 : vector<8x128xi32>
    %c128_i32_83 = arith.constant 128 : i32
    %178 = vector.broadcast %c128_i32_83 : i32 to vector<8x128xi32>
    %179 = arith.cmpi slt, %177, %178 : vector<8x128xi32>
    %180 = arith.andi %175, %179 : vector<8x128xi1>
    %cst_84 = arith.constant 0.000000e+00 : f32
    %181 = vector.broadcast %cst_84 : f32 to vector<8x128xf32>
    %182 = arith.select %180, %171, %181 : vector<8x128xi1>, vector<8x128xf32>
    %c8_85 = arith.constant 8 : index
    %c128_86 = arith.constant 128 : index
    %183 = vector.load %arg9[%c8_85, %c128_86] : memref<88x256xf32, #tpu.memory_space<vmem>>, vector<8x128xf32>
    tpu.vector_store %arg9[%c8_85, %c128_86], %182 {strides = array<i32>} : memref<88x256xf32, #tpu.memory_space<vmem>>, vector<8x128xf32>,
    %c4_i32_87 = arith.constant 4 : i32
    %184 = tpu.dynamic_rotate %157 by %c4_i32_87 dim 1 : vector<8x128xf32>, i32 -> vector<8x128xf32>
    %c-4_i32_88 = arith.constant -4 : i32
    %185 = vector.broadcast %c-4_i32_88 : i32 to vector<8x128xi32>
    %186 = arith.addi %2, %185 : vector<8x128xi32>
    %c0_i32_89 = arith.constant 0 : i32
    %187 = vector.broadcast %c0_i32_89 : i32 to vector<8x128xi32>
    %188 = arith.cmpi sge, %186, %187 : vector<8x128xi32>
    %c-4_i32_90 = arith.constant -4 : i32
    %189 = vector.broadcast %c-4_i32_90 : i32 to vector<8x128xi32>
    %190 = arith.addi %2, %189 : vector<8x128xi32>
    %c128_i32_91 = arith.constant 128 : i32
    %191 = vector.broadcast %c128_i32_91 : i32 to vector<8x128xi32>
    %192 = arith.cmpi slt, %190, %191 : vector<8x128xi32>
    %193 = arith.andi %188, %192 : vector<8x128xi1>
    %cst_92 = arith.constant 0.000000e+00 : f32
    %194 = vector.broadcast %cst_92 : f32 to vector<8x128xf32>
    %195 = arith.select %193, %184, %194 : vector<8x128xi1>, vector<8x128xf32>
    %c16_93 = arith.constant 16 : index
    %c128_94 = arith.constant 128 : index
    %196 = vector.load %arg9[%c16_93, %c128_94] : memref<88x256xf32, #tpu.memory_space<vmem>>, vector<8x128xf32>
    tpu.vector_store %arg9[%c16_93, %c128_94], %195 {strides = array<i32>} : memref<88x256xf32, #tpu.memory_space<vmem>>, vector<8x128xf32>,
    %c2_i32_95 = arith.constant 2 : i32
    %197 = tpu.dynamic_rotate %157 by %c2_i32_95 dim 1 : vector<8x128xf32>, i32 -> vector<8x128xf32>
    %c-2_i32_96 = arith.constant -2 : i32
    %198 = vector.broadcast %c-2_i32_96 : i32 to vector<8x128xi32>
    %199 = arith.addi %2, %198 : vector<8x128xi32>
    %c0_i32_97 = arith.constant 0 : i32
    %200 = vector.broadcast %c0_i32_97 : i32 to vector<8x128xi32>
    %201 = arith.cmpi sge, %199, %200 : vector<8x128xi32>
    %c-2_i32_98 = arith.constant -2 : i32
    %202 = vector.broadcast %c-2_i32_98 : i32 to vector<8x128xi32>
    %203 = arith.addi %2, %202 : vector<8x128xi32>
    %c128_i32_99 = arith.constant 128 : i32
    %204 = vector.broadcast %c128_i32_99 : i32 to vector<8x128xi32>
    %205 = arith.cmpi slt, %203, %204 : vector<8x128xi32>
    %206 = arith.andi %201, %205 : vector<8x128xi1>
    %cst_100 = arith.constant 0.000000e+00 : f32
    %207 = vector.broadcast %cst_100 : f32 to vector<8x128xf32>
    %208 = arith.select %206, %197, %207 : vector<8x128xi1>, vector<8x128xf32>
    %c24_101 = arith.constant 24 : index
    %c128_102 = arith.constant 128 : index
    %209 = vector.load %arg9[%c24_101, %c128_102] : memref<88x256xf32, #tpu.memory_space<vmem>>, vector<8x128xf32>
    tpu.vector_store %arg9[%c24_101, %c128_102], %208 {strides = array<i32>} : memref<88x256xf32, #tpu.memory_space<vmem>>, vector<8x128xf32>,
    %c1_i32_103 = arith.constant 1 : i32
    %210 = tpu.dynamic_rotate %157 by %c1_i32_103 dim 1 : vector<8x128xf32>, i32 -> vector<8x128xf32>
    %c-1_i32_104 = arith.constant -1 : i32
    %211 = vector.broadcast %c-1_i32_104 : i32 to vector<8x128xi32>
    %212 = arith.addi %2, %211 : vector<8x128xi32>
    %c0_i32_105 = arith.constant 0 : i32
    %213 = vector.broadcast %c0_i32_105 : i32 to vector<8x128xi32>
    %214 = arith.cmpi sge, %212, %213 : vector<8x128xi32>
    %c-1_i32_106 = arith.constant -1 : i32
    %215 = vector.broadcast %c-1_i32_106 : i32 to vector<8x128xi32>
    %216 = arith.addi %2, %215 : vector<8x128xi32>
    %c128_i32_107 = arith.constant 128 : i32
    %217 = vector.broadcast %c128_i32_107 : i32 to vector<8x128xi32>
    %218 = arith.cmpi slt, %216, %217 : vector<8x128xi32>
    %219 = arith.andi %214, %218 : vector<8x128xi1>
    %cst_108 = arith.constant 0.000000e+00 : f32
    %220 = vector.broadcast %cst_108 : f32 to vector<8x128xf32>
    %221 = arith.select %219, %210, %220 : vector<8x128xi1>, vector<8x128xf32>
    %c32_109 = arith.constant 32 : index
    %c128_110 = arith.constant 128 : index
    %222 = vector.load %arg9[%c32_109, %c128_110] : memref<88x256xf32, #tpu.memory_space<vmem>>, vector<8x128xf32>
    tpu.vector_store %arg9[%c32_109, %c128_110], %221 {strides = array<i32>} : memref<88x256xf32, #tpu.memory_space<vmem>>, vector<8x128xf32>,
    %c40_111 = arith.constant 40 : index
    %c128_112 = arith.constant 128 : index
    %223 = vector.load %arg9[%c40_111, %c128_112] : memref<88x256xf32, #tpu.memory_space<vmem>>, vector<8x128xf32>
    tpu.vector_store %arg9[%c40_111, %c128_112], %157 {strides = array<i32>} : memref<88x256xf32, #tpu.memory_space<vmem>>, vector<8x128xf32>,
    %c127_i32_113 = arith.constant 127 : i32
    %224 = tpu.dynamic_rotate %157 by %c127_i32_113 dim 1 : vector<8x128xf32>, i32 -> vector<8x128xf32>
    %c1_i32_114 = arith.constant 1 : i32
    %225 = vector.broadcast %c1_i32_114 : i32 to vector<8x128xi32>
    %226 = arith.addi %2, %225 : vector<8x128xi32>
    %c0_i32_115 = arith.constant 0 : i32
    %227 = vector.broadcast %c0_i32_115 : i32 to vector<8x128xi32>
    %228 = arith.cmpi sge, %226, %227 : vector<8x128xi32>
    %c1_i32_116 = arith.constant 1 : i32
    %229 = vector.broadcast %c1_i32_116 : i32 to vector<8x128xi32>
    %230 = arith.addi %2, %229 : vector<8x128xi32>
    %c128_i32_117 = arith.constant 128 : i32
    %231 = vector.broadcast %c128_i32_117 : i32 to vector<8x128xi32>
    %232 = arith.cmpi slt, %230, %231 : vector<8x128xi32>
    %233 = arith.andi %228, %232 : vector<8x128xi1>
    %cst_118 = arith.constant 0.000000e+00 : f32
    %234 = vector.broadcast %cst_118 : f32 to vector<8x128xf32>
    %235 = arith.select %233, %224, %234 : vector<8x128xi1>, vector<8x128xf32>
    %c48_119 = arith.constant 48 : index
    %c128_120 = arith.constant 128 : index
    %236 = vector.load %arg9[%c48_119, %c128_120] : memref<88x256xf32, #tpu.memory_space<vmem>>, vector<8x128xf32>
    tpu.vector_store %arg9[%c48_119, %c128_120], %235 {strides = array<i32>} : memref<88x256xf32, #tpu.memory_space<vmem>>, vector<8x128xf32>,
    %c126_i32_121 = arith.constant 126 : i32
    %237 = tpu.dynamic_rotate %157 by %c126_i32_121 dim 1 : vector<8x128xf32>, i32 -> vector<8x128xf32>
    %c2_i32_122 = arith.constant 2 : i32
    %238 = vector.broadcast %c2_i32_122 : i32 to vector<8x128xi32>
    %239 = arith.addi %2, %238 : vector<8x128xi32>
    %c0_i32_123 = arith.constant 0 : i32
    %240 = vector.broadcast %c0_i32_123 : i32 to vector<8x128xi32>
    %241 = arith.cmpi sge, %239, %240 : vector<8x128xi32>
    %c2_i32_124 = arith.constant 2 : i32
    %242 = vector.broadcast %c2_i32_124 : i32 to vector<8x128xi32>
    %243 = arith.addi %2, %242 : vector<8x128xi32>
    %c128_i32_125 = arith.constant 128 : i32
    %244 = vector.broadcast %c128_i32_125 : i32 to vector<8x128xi32>
    %245 = arith.cmpi slt, %243, %244 : vector<8x128xi32>
    %246 = arith.andi %241, %245 : vector<8x128xi1>
    %cst_126 = arith.constant 0.000000e+00 : f32
    %247 = vector.broadcast %cst_126 : f32 to vector<8x128xf32>
    %248 = arith.select %246, %237, %247 : vector<8x128xi1>, vector<8x128xf32>
    %c56_127 = arith.constant 56 : index
    %c128_128 = arith.constant 128 : index
    %249 = vector.load %arg9[%c56_127, %c128_128] : memref<88x256xf32, #tpu.memory_space<vmem>>, vector<8x128xf32>
    tpu.vector_store %arg9[%c56_127, %c128_128], %248 {strides = array<i32>} : memref<88x256xf32, #tpu.memory_space<vmem>>, vector<8x128xf32>,
    %c124_i32_129 = arith.constant 124 : i32
    %250 = tpu.dynamic_rotate %157 by %c124_i32_129 dim 1 : vector<8x128xf32>, i32 -> vector<8x128xf32>
    %c4_i32_130 = arith.constant 4 : i32
    %251 = vector.broadcast %c4_i32_130 : i32 to vector<8x128xi32>
    %252 = arith.addi %2, %251 : vector<8x128xi32>
    %c0_i32_131 = arith.constant 0 : i32
    %253 = vector.broadcast %c0_i32_131 : i32 to vector<8x128xi32>
    %254 = arith.cmpi sge, %252, %253 : vector<8x128xi32>
    %c4_i32_132 = arith.constant 4 : i32
    %255 = vector.broadcast %c4_i32_132 : i32 to vector<8x128xi32>
    %256 = arith.addi %2, %255 : vector<8x128xi32>
    %c128_i32_133 = arith.constant 128 : i32
    %257 = vector.broadcast %c128_i32_133 : i32 to vector<8x128xi32>
    %258 = arith.cmpi slt, %256, %257 : vector<8x128xi32>
    %259 = arith.andi %254, %258 : vector<8x128xi1>
    %cst_134 = arith.constant 0.000000e+00 : f32
    %260 = vector.broadcast %cst_134 : f32 to vector<8x128xf32>
    %261 = arith.select %259, %250, %260 : vector<8x128xi1>, vector<8x128xf32>
    %c64_135 = arith.constant 64 : index
    %c128_136 = arith.constant 128 : index
    %262 = vector.load %arg9[%c64_135, %c128_136] : memref<88x256xf32, #tpu.memory_space<vmem>>, vector<8x128xf32>
    tpu.vector_store %arg9[%c64_135, %c128_136], %261 {strides = array<i32>} : memref<88x256xf32, #tpu.memory_space<vmem>>, vector<8x128xf32>,
    %c120_i32_137 = arith.constant 120 : i32
    %263 = tpu.dynamic_rotate %157 by %c120_i32_137 dim 1 : vector<8x128xf32>, i32 -> vector<8x128xf32>
    %c8_i32_138 = arith.constant 8 : i32
    %264 = vector.broadcast %c8_i32_138 : i32 to vector<8x128xi32>
    %265 = arith.addi %2, %264 : vector<8x128xi32>
    %c0_i32_139 = arith.constant 0 : i32
    %266 = vector.broadcast %c0_i32_139 : i32 to vector<8x128xi32>
    %267 = arith.cmpi sge, %265, %266 : vector<8x128xi32>
    %c8_i32_140 = arith.constant 8 : i32
    %268 = vector.broadcast %c8_i32_140 : i32 to vector<8x128xi32>
    %269 = arith.addi %2, %268 : vector<8x128xi32>
    %c128_i32_141 = arith.constant 128 : i32
    %270 = vector.broadcast %c128_i32_141 : i32 to vector<8x128xi32>
    %271 = arith.cmpi slt, %269, %270 : vector<8x128xi32>
    %272 = arith.andi %267, %271 : vector<8x128xi1>
    %cst_142 = arith.constant 0.000000e+00 : f32
    %273 = vector.broadcast %cst_142 : f32 to vector<8x128xf32>
    %274 = arith.select %272, %263, %273 : vector<8x128xi1>, vector<8x128xf32>
    %c72_143 = arith.constant 72 : index
    %c128_144 = arith.constant 128 : index
    %275 = vector.load %arg9[%c72_143, %c128_144] : memref<88x256xf32, #tpu.memory_space<vmem>>, vector<8x128xf32>
    tpu.vector_store %arg9[%c72_143, %c128_144], %274 {strides = array<i32>} : memref<88x256xf32, #tpu.memory_space<vmem>>, vector<8x128xf32>,
    %c112_i32_145 = arith.constant 112 : i32
    %276 = tpu.dynamic_rotate %157 by %c112_i32_145 dim 1 : vector<8x128xf32>, i32 -> vector<8x128xf32>
    %c16_i32_146 = arith.constant 16 : i32
    %277 = vector.broadcast %c16_i32_146 : i32 to vector<8x128xi32>
    %278 = arith.addi %2, %277 : vector<8x128xi32>
    %c0_i32_147 = arith.constant 0 : i32
    %279 = vector.broadcast %c0_i32_147 : i32 to vector<8x128xi32>
    %280 = arith.cmpi sge, %278, %279 : vector<8x128xi32>
    %c16_i32_148 = arith.constant 16 : i32
    %281 = vector.broadcast %c16_i32_148 : i32 to vector<8x128xi32>
    %282 = arith.addi %2, %281 : vector<8x128xi32>
    %c128_i32_149 = arith.constant 128 : i32
    %283 = vector.broadcast %c128_i32_149 : i32 to vector<8x128xi32>
    %284 = arith.cmpi slt, %282, %283 : vector<8x128xi32>
    %285 = arith.andi %280, %284 : vector<8x128xi1>
    %cst_150 = arith.constant 0.000000e+00 : f32
    %286 = vector.broadcast %cst_150 : f32 to vector<8x128xf32>
    %287 = arith.select %285, %276, %286 : vector<8x128xi1>, vector<8x128xf32>
    %c80_151 = arith.constant 80 : index
    %c128_152 = arith.constant 128 : index
    %288 = vector.load %arg9[%c80_151, %c128_152] : memref<88x256xf32, #tpu.memory_space<vmem>>, vector<8x128xf32>
    tpu.vector_store %arg9[%c80_151, %c128_152], %287 {strides = array<i32>} : memref<88x256xf32, #tpu.memory_space<vmem>>, vector<8x128xf32>,
    %c0_153 = arith.constant 0 : index
    %c0_154 = arith.constant 0 : index
    %289 = vector.load %arg4[%c0_153, %c0_154] : memref<20x88xf32, #tpu.memory_space<vmem>>, vector<20x88xf32>
    %c0_155 = arith.constant 0 : index
    %c0_156 = arith.constant 0 : index
    %290 = vector.load %arg9[%c0_155, %c0_156] : memref<88x256xf32, #tpu.memory_space<vmem>>, vector<88x256xf32>
    %cst_157 = arith.constant dense<0.000000e+00> : vector<20x256xf32>
    %291 = tpu.matmul %289, %290, %cst_157 {dimension_numbers = #tpu.dot_dimension_numbers<[1], [0], [0], [1], [0, 0, 1, 1], [], []>} : vector<20x88xf32>, vector<88x256xf32>, vector<20x256xf32> -> vector<20x256xf32>
    %c0_158 = arith.constant 0 : index
    %c0_159 = arith.constant 0 : index
    %292 = vector.load %arg6[%c0_158, %c0_159] : memref<20x1xf32, #tpu.memory_space<vmem>>, vector<20x1xf32>
    %293 = vector.broadcast %292 : vector<20x1xf32> to vector<20x256xf32>
    %294 = arith.addf %291, %293 : vector<20x256xf32>
    %295 = vector.extract_strided_slice %294 {offsets = [0, 0], sizes = [20, 128], strides = [1, 1]} : vector<20x256xf32> to vector<20x128xf32>
    %c0_160 = arith.constant 0 : index
    %c0_161 = arith.constant 0 : index
    %296 = vector.load %arg5[%c0_160, %c0_161] : memref<20x1xf32, #tpu.memory_space<vmem>>, vector<20x1xf32>
    %c0_162 = arith.constant 0 : index
    %c0_163 = arith.constant 0 : index
    %c0_164 = arith.constant 0 : index
    %297 = vector.load %arg1[%c0_162, %c0_163, %c0_164] : memref<2x20x128xf32, #tpu.memory_space<vmem>>, vector<1x20x128xf32>
    %298 = vector.shape_cast %297 : vector<1x20x128xf32> to vector<20x128xf32>
    %299 = vector.broadcast %296 : vector<20x1xf32> to vector<20x128xf32>
    %300 = arith.mulf %299, %298 : vector<20x128xf32>
    %301 = arith.addf %295, %300 : vector<20x128xf32>
    %cst_165 = arith.constant 0.000000e+00 : f32
    %302 = vector.broadcast %cst_165 : f32 to vector<20x128xf32>
    %303 = arith.cmpf ogt, %301, %302 : vector<20x128xf32>
    %304 = vector.broadcast %1 : f32 to vector<20x128xf32>
    %305 = arith.mulf %304, %301 : vector<20x128xf32>
    %306 = arith.select %303, %301, %305 : vector<20x128xi1>, vector<20x128xf32>
    %c0_166 = arith.constant 0 : index
    %c0_167 = arith.constant 0 : index
    %c0_168 = arith.constant 0 : index
    %307 = vector.load %arg8[%c0_166, %c0_167, %c0_168] : memref<2x20x128xf32, #tpu.memory_space<vmem>>, vector<1x20x128xf32>
    %308 = vector.shape_cast %307 : vector<1x20x128xf32> to vector<20x128xf32>
    %309 = vector.shape_cast %306 : vector<20x128xf32> to vector<1x20x128xf32>
    tpu.vector_store %arg8[%c0_166, %c0_167, %c0_168], %309 {strides = array<i32>} : memref<2x20x128xf32, #tpu.memory_space<vmem>>, vector<1x20x128xf32>,
    %310 = vector.extract_strided_slice %294 {offsets = [0, 128], sizes = [20, 128], strides = [1, 1]} : vector<20x256xf32> to vector<20x128xf32>
    %c0_169 = arith.constant 0 : index
    %c0_170 = arith.constant 0 : index
    %311 = vector.load %arg5[%c0_169, %c0_170] : memref<20x1xf32, #tpu.memory_space<vmem>>, vector<20x1xf32>
    %c1_171 = arith.constant 1 : index
    %c0_172 = arith.constant 0 : index
    %c0_173 = arith.constant 0 : index
    %312 = vector.load %arg1[%c1_171, %c0_172, %c0_173] : memref<2x20x128xf32, #tpu.memory_space<vmem>>, vector<1x20x128xf32>
    %313 = vector.shape_cast %312 : vector<1x20x128xf32> to vector<20x128xf32>
    %314 = vector.broadcast %311 : vector<20x1xf32> to vector<20x128xf32>
    %315 = arith.mulf %314, %313 : vector<20x128xf32>
    %316 = arith.addf %310, %315 : vector<20x128xf32>
    %cst_174 = arith.constant 0.000000e+00 : f32
    %317 = vector.broadcast %cst_174 : f32 to vector<20x128xf32>
    %318 = arith.cmpf ogt, %316, %317 : vector<20x128xf32>
    %319 = vector.broadcast %1 : f32 to vector<20x128xf32>
    %320 = arith.mulf %319, %316 : vector<20x128xf32>
    %321 = arith.select %318, %316, %320 : vector<20x128xi1>, vector<20x128xf32>
    %c1_175 = arith.constant 1 : index
    %c0_176 = arith.constant 0 : index
    %c0_177 = arith.constant 0 : index
    %322 = vector.load %arg8[%c1_175, %c0_176, %c0_177] : memref<2x20x128xf32, #tpu.memory_space<vmem>>, vector<1x20x128xf32>
    %323 = vector.shape_cast %322 : vector<1x20x128xf32> to vector<20x128xf32>
    %324 = vector.shape_cast %321 : vector<20x128xf32> to vector<1x20x128xf32>
    tpu.vector_store %arg8[%c1_175, %c0_176, %c0_177], %324 {strides = array<i32>} : memref<2x20x128xf32, #tpu.memory_space<vmem>>, vector<1x20x128xf32>,
    return
  }
  func.func @transform_0(%arg0: i32) -> (i32, i32, i32) {
    %c0_i32 = arith.constant 0 : i32
    %c0_i32_0 = arith.constant 0 : i32
    %c0_i32_1 = arith.constant 0 : i32
    return %arg0, %c0_i32, %c0_i32_0 : i32, i32, i32
  }
  func.func @transform_1(%arg0: i32) -> (i32, i32) {
    %c0_i32 = arith.constant 0 : i32
    %c0_i32_0 = arith.constant 0 : i32
    %c0_i32_1 = arith.constant 0 : i32
    return %c0_i32, %c0_i32_0 : i32, i32
  }
  func.func @transform_2(%arg0: i32) -> (i32, i32) {
    %c0_i32 = arith.constant 0 : i32
    %c0_i32_0 = arith.constant 0 : i32
    %c0_i32_1 = arith.constant 0 : i32
    return %c0_i32, %c0_i32_0 : i32, i32
  }
  func.func @transform_3(%arg0: i32) -> (i32, i32) {
    %c0_i32 = arith.constant 0 : i32
    %c0_i32_0 = arith.constant 0 : i32
    %c0_i32_1 = arith.constant 0 : i32
    return %c0_i32, %c0_i32_0 : i32, i32
  }
  func.func @transform_4(%arg0: i32) -> (i32, i32) {
    %c0_i32 = arith.constant 0 : i32
    %c0_i32_0 = arith.constant 0 : i32
    %c0_i32_1 = arith.constant 0 : i32
    return %c0_i32, %c0_i32_0 : i32, i32
  }
  func.func @transform_5(%arg0: i32) -> (i32, i32) {
    %c0_i32 = arith.constant 0 : i32
    %c0_i32_0 = arith.constant 0 : i32
    %c0_i32_1 = arith.constant 0 : i32
    return %c0_i32, %c0_i32_0 : i32, i32
  }
  func.func @transform_6(%arg0: i32) -> i32 {
    %c0_i32 = arith.constant 0 : i32
    %c0_i32_0 = arith.constant 0 : i32
    return %c0_i32 : i32
  }
  func.func @transform_7(%arg0: i32) -> (i32, i32, i32) {
    %c0_i32 = arith.constant 0 : i32
    %c0_i32_0 = arith.constant 0 : i32
    %c0_i32_1 = arith.constant 0 : i32
    return %arg0, %c0_i32, %c0_i32_0 : i32, i32, i32
  }
}

</mosaic_0001>

<bundles_post_ra>
// kernel: tpu_custom_call.1
= control target key start
LH: loop header
LB: loop body
LE: loop exit
PB: predicated region body
PF: predicated region fallthrough
CT: control target
= control target key end

     0   :  { %12 = vsyncpa [#allocation4], 0  ;;  %s1172_s24 = smov 0   ;;  %s1336_s0 = inlined_call_operand.vmem [shape: f32[4,20,128], index: 0, kind: input, shape index: {}]   ;;  %s1337_s1 = inlined_call_operand.vmem [shape: f32[8,20], index: 1, kind: input, shape index: {}]   ;;  %s1338_s2 = inlined_call_operand.vmem [shape: f32[8,1], index: 2, kind: input, shape index: {}]   ;;  %s1339_s3 = inlined_call_operand.vmem [shape: f32[20,88], index: 3, kind: input, shape index: {}]   ;;  %s1340_s4 = inlined_call_operand.vmem [shape: f32[20,1], index: 4, kind: input, shape index: {}]   ;;  %s1341_s5 = inlined_call_operand.vmem [shape: f32[20,1], index: 5, kind: input, shape index: {}]   ;;  %s1342_s6 = inlined_call_operand.vmem [shape: f32[2], index: 6, kind: input, shape index: {}]   ;;  %s1343_s7 = inlined_call_operand.vmem [shape: f32[4,20,128], index: 7, kind: output, shape index: {}]  }
   0x1 LB: > { %s895_s25 = sadd.s32 4294967295, %s1114_s24   ;;  %p897_p0 = scmp.ge.s32.totalorder %s1114_s24, 1  ;;  %s1114_s24 = sphi %s1172_s24, %s18_s24  }
   0x2   : > { %p201_p1 = scmp.lt.s32.totalorder %s1114_s24, 3  ;;  %s229_s28 = sshll.u32 %s1342_s6, 4  ;;  %s230_s28 = int_to_ptr.vmem [resolvable:$true] %s229_s28 }
   0x3   : > { %p1187_p3 = scmp.eq.s32.totalorder %s895_s25, 0  ;;  %s1089_s8 = scalar_lea.vmem %s230_s28, 16 }
   0x4   : > { %p1183_p2 = pnand %p897_p0, %p201_p1  ;;  %p1090_p6 = scmp.ne.s32.totalorder %s230_s28, %s1089_s8 }
   0x5   : > { %p1097_p10 = scmp.lt.s32.totalorder %s230_s28, %s230_s28  ;;  %p1098_p11 = scmp.lt.s32.totalorder %s1089_s8, %s1089_s8 }
   0x6   : > { %p1012_p4 = pneg %p1183_p2 }
   0x7   : > { %p1099_p12 = por %p1098_p11, %p1097_p10 }
   0x8   : > { %p1013_p5 = pnand %p1187_p3, %p1012_p4 }
   0xa   : > { %p1091_p7 = pneg %p1013_p5 }
   0xc   : > { %p1092_p8 = pnand %p1091_p7, %p1090_p6 }
   0xe   : > { %p1093_p9 = pneg %p1092_p8 }
  0x10   : > { %p1100_p13 = pnand %p1099_p12, %p1093_p9 }
  0x12   : > { %1103 = shalt.err (!%p1100_p13)
}
  0x13   : > { %s1116_s9 = smov [#allocation3]   ;;  %252 = sbr.rel (%p1183_p2) target bundleno = 643 (0x283), region = 48 }
  0x14   : > { %1015 = dma.vmem_to_smem (!%p1013_p5), %s230_s28, 16, %s1116_s9, [#allocation4]  }
  0x1a   : > { %1109 = dma.done.wait (%p1187_p3), [#allocation4], 16  }
  0x1b   : > { %1111 = vsyncadd (%p1187_p3), [#allocation4], 4294967280 }
  0x1c   : > { %258 = sfence }
  0x1d   : > { %s902_s10 = sshll.u32 %s895_s25, 1  ;;  %v1117_v0 = vmov 0.0|0.0   ;;  %vm1118_vm0 = vmmov 0   ;;  %v1119_v1 = vmov 0.0   ;;  %v483_v2 = vld [vmem:[%s1338_s2] sm:$0xff]  ;;  %v1120_v3 = vmov 0  }
  0x1e   : > { %971 = vmatprep.subr.bf16.mxu1 %v1117_v0  ;;  %p288_p0 = scmp.lt.s32.totalorder %s902_s10, 3  ;;  %959 = vmatprep.mubr.msk.f32.mxu1 %vm1118_vm0, %v1119_v1  ;;  %vm319_vm1 = vcmask 1043456   ;;  %v305_v10 = vld [vmem:[%s1337_s1] sm:$0xff]  ;;  %vm315_vm2 = vcmask 162816   ;;  %s301_s19 = sld [smem:[#allocation3]]  ;;  %v635_v27 = vld [vmem:[%s1341_s5 + $0x8] sm:$0xff]  ;;  %v303_v34 = vlaneseq }
  0x1f   : > { %1042 = vset.pattern.permute.xlu0 %v1120_v3  ;;  %726 = vmatprep.mubr.f32.mxu0 %v1119_v1  ;;  %s1121_s20 = smov 4   ;;  %s1122_s21 = smov 16   ;;  %v745_v28 = vld [vmem:[%s1340_s4] sm:$0xff]  ;;  %v747_v29 = vld [vmem:[%s1340_s4 + $0x10] sm:$0xf]  ;;  %v786_v30 = vld [vmem:[%s1340_s4 + $0x8] sm:$0xff] }
  0x20   : > { %s1351_s10 = smov (!%p288_p0, %s902_s10), 3  ;;  %486 = vperm.xlu0 %1042, %v483_v2   ;;  %1088 = vset.pattern.permute.xlu1 %v1120_v3  ;;  %s1123_s22 = smov 1   ;;  %v634_v31 = vld [vmem:[%s1341_s5] sm:$0xff]  ;;  %v636_v32 = vld [vmem:[%s1341_s5 + $0x10] sm:$0xf]  ;;  %v1271_v35 = vand.u32 127, %v303_v34 }
  0x21   : > { %s1007_s13 = smul.u32 24, %s1351_s10  ;;  %s1124_s23 = smov 8   ;;  %v787_v33 = vld [vmem:[%s1340_s4 + $0x10] sm:$0xf]  ;;  %vm1131_vm12 = vmmov 1  }
  0x22   : > { %s1125_s25 = smov 126   ;;  %s1126_s26 = smov 2   ;;  %v399_v36 = vadd.s32 4294967280, %v1271_v35  ;;  %v407_v37 = vadd.s32 4294967288, %v1271_v35  ;;  %v415_v40 = vadd.s32 4294967292, %v1271_v35  ;;  %v423_v41 = vadd.s32 4294967294, %v1271_v35 }
  0x23   : > { %s1215_s16 = scalar_lea.vmem %s1336_s0, %s1007_s13  ;;  %s1127_s27 = smov 120   ;;  %v431_v42 = vadd.s32 4294967295, %v1271_v35  ;;  %v440_v54 = vadd.s32 1, %v1271_v35  ;;  %v448_v55 = vadd.s32 2, %v1271_v35 }
  0x24   : > { %312 = vperm.xlu0 %1042, %v483_v2   ;;  %v1218_v4 = vld [vmem:[%s1215_s16] sm:$0xff]  ;;  %v1221_v5 = vld [vmem:[%s1215_s16 + $0x8] sm:$0xff]  ;;  %v1226_v7 = vld [vmem:[%s1215_s16 + $0x18] sm:$0xff]  ;;  %v394_v18 = vstv %s301_s19  ;;  %s1128_s28 = smov 127   ;;  %s1129_s29 = smov 112   ;;  %vm400_vm5 = vcmp.ge.s32.totalorder %v399_v36, 0 }
  0x25   : > { %v972_v6 = vpack.c.bf16 %v1221_v5, %v1218_v4  ;;  %v1229_v8 = vld [vmem:[%s1215_s16 + $0x20] sm:$0xff]  ;;  %v308_v9 = vld [vmem:[%s1215_s16 + $0x10] sm:$0xf]  ;;  %v911_v12 = vld [vmem:[%s1215_s16 + $0x28] sm:$0xf]  ;;  %s1130_s30 = smov 124   ;;  %s1322_s14 = scalar_lea.vmem %s1343_s7, %s1007_s13 }
  0x26   : > { %v975_v11 = vpack.c.bf16 %v1229_v8, %v1226_v7  ;;  %vm408_vm6 = vcmp.ge.s32.totalorder %v407_v37, 0  ;;  %vm416_vm8 = vcmp.ge.s32.totalorder %v415_v40, 0  ;;  %vm424_vm9 = vcmp.ge.s32.totalorder %v423_v41, 0  ;;  %s906_s9 = sld [smem:[#allocation3 + $0x1]] }
  0x27   : > { %973 = vmatpush3.bf16.msra.mxu1 %v972_v6  ;;  %vm1278_vm7 = vmpackc.low %vm408_vm6, %vm400_vm5  ;;  %vm432_vm10 = vcmp.ge.s32.totalorder %v431_v42, 0  ;;  %vm442_vm14 = vcmp.lt.s32.totalorder %v440_v54, 128  ;;  %vm450_vm15 = vcmp.lt.s32.totalorder %v448_v55, 128  ;;  %vm652_vm5 = vcmask 719872   ;;  %v919_v54 = vld [vmem:[%s1215_s16 + $0x28] sm:$0xf] }
  0x28   : > { %957 = vmatprep.subr.mxu1 %v1119_v1  ;;  %vm984_vm11 = vmpackc.low %vm424_vm9, %vm416_vm8 }
  0x29   : > { %vm1290_vm13 = vmpackc.low %vm1131_vm12, %vm432_vm10 }
  0x2b   : > { %958 = vmatpush3.msk.msra.mxu1 %vm319_vm1, %v308_v9  ;;  %v456_v9 = vadd.s32 4, %v1271_v35 }
  0x2c   : > { %960 = vmatmul.mubr.msk.f32.vlgmr.msra.gmra.mrb[0].mxu1 %vm315_vm2, %v305_v10  ;;  %974 = vmatprep.subr.bf16.mxu1 %v1117_v0  ;;  %v775_v42 = vstv %s906_s9 }
  0x2d   : > { %976 = vmatpush3.bf16.msra.mxu1 %v975_v11  ;;  %968 = vmatprep.mubr.msk.f32.mxu1 %vm1118_vm0, %v1119_v1  ;;  %vm996_vm0 = vmpackc.low %vm450_vm15, %vm442_vm14 }
  0x2e   : > { %966 = vmatprep.subr.mxu1 %v1119_v1 }
  0x31   : > { %967 = vmatpush3.msk.msra.mxu1 %vm319_vm1, %v911_v12  ;;  %vm458_vm1 = vcmp.lt.s32.totalorder %v456_v9, 128 }
  0x32   : > { %969 = vmatmul.mubr.msk.f32.vlgmr.msra.gmra.mrb[2].mxu1 %vm315_vm2, %v305_v10  ;;  %v464_v10 = vadd.s32 8, %v1271_v35 }
  0x34   : > { %vm466_vm2 = vcmp.lt.s32.totalorder %v464_v10, 128 }
  0x9f   : > { %v487_v13 = vpop.permute.xlu0 %486 }
  0xa3   : > { %v313_v14 = vpop.permute.xlu0 %312 }
  0xff   : > { %v389_v15 = vpop.f32.mrb[0].mxu1 }
 0x100   : > { %v961_v16 = vpop.f32.mrb[1].mxu1  ;;  %v390_v17 = vadd.f32 %v389_v15, %v313_v14 }
 0x102   : > { %v395_v20 = vmul.f32 %v394_v18, %v390_v17  ;;  %vm393_vm3 = vcmp.gt.f32.partialorder %v390_v17, 0.0 }
 0x104   : > { %v1242_v24 = vsel %vm393_vm3, %v390_v17, %v395_v20  ;;  %vm1002_vm3 = vmpackc.low %vm466_vm2, %vm458_vm1 }
 0x105   : > { %v561_v19 = vpop.f32.mrb[2].mxu1 }
 0x106   : > { %v562_v21 = vadd.f32 %v561_v19, %v487_v13  ;;  %v970_v22 = vpop.f32.mrb[3].mxu1 }
 0x107   : > { %v472_v22 = vadd.s32 16, %v1271_v35 }
 0x108   : > { %vm565_vm4 = vcmp.gt.f32.partialorder %v562_v21, 0.0  ;;  %v566_v23 = vmul.f32 %v562_v21, %v394_v18 }
 0x10a   : > { %v1244_v25 = vsel %vm565_vm4, %v562_v21, %v566_v23  ;;  %vm474_vm4 = vcmp.lt.s32.totalorder %v472_v22, 128 }
 0x10b   : > { %v1053_v26 = vpack.i.bf16 %v1242_v24, %v1244_v25 }
 0x10d   : > { %1054 = vrot.lane.b32.xlu0 %v1053_v26, %s1121_s20  ;;  %1044 = vrot.lane.b32.xlu1 %v1053_v26, %s1122_s21 }
 0x111   : > { %1064 = vrot.lane.b32.xlu0 %v1053_v26, %s1123_s22  ;;  %1049 = vrot.lane.b32.xlu1 %v1053_v26, %s1124_s23 }
 0x115   : > { %1074 = vrot.lane.b32.xlu0 %v1053_v26, %s1125_s25  ;;  %1059 = vrot.lane.b32.xlu1 %v1053_v26, %s1126_s26 }
 0x119   : > { %1084 = vrot.lane.b32.xlu0 %v1053_v26, %s1127_s27  ;;  %1069 = vrot.lane.b32.xlu1 %v1053_v26, %s1128_s28 }
 0x11d   : > { %470 = vrot.lane.b32.xlu0 %v1242_v24, %s1129_s29  ;;  %1079 = vrot.lane.b32.xlu1 %v1053_v26, %s1130_s30 }
 0x121   : > { %644 = vperm.xlu0 %1042, %v635_v27   ;;  %605 = vrot.lane.b32.xlu1 %v1244_v25, %s1129_s29  ;;  %v609_v27 = vld [vmem:[%s1339_s3] sm:$0xff] }
 0x125   : > { %753 = vperm.xlu0 %1042, %v745_v28   ;;  %639 = vperm.xlu1 %1088, %v634_v31  }
 0x129   : > { %763 = vperm.xlu0 %1042, %v747_v29   ;;  %649 = vperm.xlu1 %1088, %v636_v32   ;;  %v610_v29 = vld [vmem:[%s1339_s3 + $0x8] sm:$0xff] }
 0x12d   : > { %798 = vperm.xlu0 %1042, %v786_v30   ;;  %758 = vperm.xlu1 %1088, %v786_v30   ;;  %v611_v30 = vld [vmem:[%s1339_s3 + $0x10] sm:$0xf] }
 0x131   : > { %793 = vperm.xlu1 %1088, %v745_v28  }
 0x135   : > { %803 = vperm.xlu1 %1088, %v787_v33  }
 0x17f   : > { %v1055_v38 = vpop.permute.xlu0 %1054  ;;  %v1045_v39 = vpop.permute.xlu1 %1044 }
 0x180   : > { %v1047_v45 = vunpack.i.h.bf16 %v1045_v39  ;;  %v1046_v46 = vunpack.i.l.bf16 %v1045_v39  ;;  %v1057_v52 = vunpack.i.h.bf16 %v1055_v38  ;;  %v1056_v56 = vunpack.i.l.bf16 %v1055_v38 }
 0x183   : > { %v1065_v43 = vpop.permute.xlu0 %1064  ;;  %v1050_v44 = vpop.permute.xlu1 %1049 }
 0x184   : > { %v1052_v47 = vunpack.i.h.bf16 %v1050_v44  ;;  %v1051_v48 = vunpack.i.l.bf16 %v1050_v44  ;;  %v1066_v57 = vunpack.i.l.bf16 %v1065_v43  ;;  %v1067_v63 = vunpack.i.h.bf16 %v1065_v43 }
 0x186   : > { %v980_v50 = vpack.c.bf16 %v1052_v47, %v1047_v45  ;;  %v977_v51 = vpack.c.bf16 %v1051_v48, %v1046_v46  ;;  %v989_v3 = vpack.c.bf16 %v1244_v25, %v1066_v57  ;;  %v992_v12 = vpack.c.bf16 %v1242_v24, %v1067_v63 }
 0x187   : > { %v1060_v53 = vpop.permute.xlu1 %1059  ;;  %v1075_v60 = vpop.permute.xlu0 %1074 }
 0x188   : > { %v1062_v58 = vunpack.i.h.bf16 %v1060_v53  ;;  %v1061_v59 = vunpack.i.l.bf16 %v1060_v53  ;;  %979 = vmatprep.subr.msk.bf16.mxu0 %vm1278_vm7, %v977_v51  ;;  %v1076_v11 = vunpack.i.l.bf16 %v1075_v60  ;;  %v1077_v18 = vunpack.i.h.bf16 %v1075_v60 }
 0x189   : > { %982 = vmatpush1.bf16.msk.msra.mxu0 %vm1278_vm7, %v980_v50  ;;  %v750_v50 = vld [vmem:[%s1215_s16 + $0x10] sm:$0xf] }
 0x18a   : > { %v986_v61 = vpack.c.bf16 %v1062_v58, %v1057_v52  ;;  %v983_v62 = vpack.c.bf16 %v1061_v59, %v1056_v56 }
 0x18b   : > { %v1070_v0 = vpop.permute.xlu1 %1069  ;;  %v1085_v13 = vpop.permute.xlu0 %1084 }
 0x18c   : > { %v1071_v6 = vunpack.i.l.bf16 %v1070_v0  ;;  %985 = vmatprep.subr.msk.bf16.mxu0 %vm984_vm11, %v983_v62  ;;  %v1072_v14 = vunpack.i.h.bf16 %v1070_v0  ;;  %v1086_v19 = vunpack.i.l.bf16 %v1085_v13  ;;  %v1087_v24 = vunpack.i.h.bf16 %v1085_v13 }
 0x18d   : > { %988 = vmatpush1.bf16.msk.msra.mxu0 %vm984_vm11, %v986_v61 }
 0x18e   : > { %991 = vmatprep.subr.msk.bf16.mxu0 %vm1290_vm13, %v989_v3  ;;  %v995_v16 = vpack.c.bf16 %v1076_v11, %v1071_v6  ;;  %v998_v20 = vpack.c.bf16 %v1077_v18, %v1072_v14 }
 0x18f   : > { %v1080_v15 = vpop.permute.xlu1 %1079  ;;  %v471_v28 = vpop.permute.xlu0 %470 }
 0x190   : > { %v1081_v17 = vunpack.i.l.bf16 %v1080_v15  ;;  %v1082_v21 = vunpack.i.h.bf16 %v1080_v15 }
 0x191   : > { %994 = vmatpush1.bf16.msk.msra.mxu0 %vm1290_vm13, %v992_v12 }
 0x192   : > { %997 = vmatprep.subr.msk.bf16.mxu0 %vm996_vm0, %v995_v16  ;;  %v1001_v23 = vpack.c.bf16 %v1086_v19, %v1081_v17  ;;  %v1004_v25 = vpack.c.bf16 %v1087_v24, %v1082_v21 }
 0x193   : > { %v606_v26 = vpop.permute.xlu1 %605 }
 0x195   : > { %1000 = vmatpush1.bf16.msk.msra.mxu0 %vm996_vm0, %v998_v20 }
 0x196   : > { %1003 = vmatprep.subr.msk.bf16.mxu0 %vm1002_vm3, %v1001_v23 }
 0x199   : > { %1006 = vmatpush1.bf16.msk.msra.mxu0 %vm1002_vm3, %v1004_v25 }
 0x19a   : > { %943 = vmatprep.subr.msk.mxu0 %vm474_vm4, %v606_v26 }
 0x19d   : > { %944 = vmatpush1.msk.msra.mxu0 %vm474_vm4, %v471_v28 }
 0x19e   : > { %914 = vmatmul.mubr.msk.f32.vlgmr.msra.gmra.mrb[0].mxu0 %vm652_vm5, %v609_v27 }
 0x19f   : > { %732 = vmatprep.mubr.f32.mxu0 %v1119_v1 }
 0x1a0   : > { %v645_v32 = vpop.permute.xlu0 %644 }
 0x1a2   : > { %915 = vmatmul.mubr.msk.f32.gmra.mrb[2].mxu0 %vm652_vm5, %v610_v29 }
 0x1a3   : > { %738 = vmatprep.mubr.f32.mxu0 %v1119_v1 }
 0x1a4   : > { %v640_v31 = vpop.permute.xlu1 %639  ;;  %v754_v34 = vpop.permute.xlu0 %753 }
 0x1a5   : > { %v766_v38 = vmul.f32 %v754_v34, %v1218_v4 }
 0x1a6   : > { %916 = vmatmul.mubr.msk.f32.gmra.mrb[4].mxu0 %vm652_vm5, %v611_v30 }
 0x1a8   : > { %v650_v33 = vpop.permute.xlu1 %649  ;;  %v764_v36 = vpop.permute.xlu0 %763 }
 0x1a9   : > { %v768_v60 = vmul.f32 %v764_v36, %v750_v50 }
 0x1ac   : > { %v759_v35 = vpop.permute.xlu1 %758  ;;  %v799_v44 = vpop.permute.xlu0 %798 }
 0x1ad   : > { %v767_v48 = vmul.f32 %v759_v35, %v1221_v5  ;;  %v807_v51 = vmul.f32 %v1229_v8, %v799_v44 }
 0x1b0   : > { %v794_v39 = vpop.permute.xlu1 %793 }
 0x1b1   : > { %v806_v41 = vmul.f32 %v1226_v7, %v794_v39 }
 0x1b4   : > { %v804_v5 = vpop.permute.xlu1 %803 }
 0x1b5   : > { %v808_v8 = vmul.f32 %v919_v54, %v804_v5 }
 0x271   : > { %v728_v37 = vpop.f32.mrb[0].mxu0 }
 0x272   : > { %v729_v40 = vadd.f32 %v728_v37, %v640_v31  ;;  %v730_v1 = vpop.f32.mrb[1].mxu0 }
 0x273   : > { %v731_v43 = vadd.f32 %v730_v1, %v640_v31 }
 0x274   : > { %v769_v45 = vadd.f32 %v766_v38, %v729_v40 }
 0x275   : > { %v809_v46 = vadd.f32 %v806_v41, %v731_v43  ;;  %v734_v47 = vpop.f32.mrb[2].mxu0 }
 0x276   : > { %vm772_vm6 = vcmp.gt.f32.partialorder %v769_v45, 0.0  ;;  %v776_v4 = vmul.f32 %v775_v42, %v769_v45  ;;  %v735_v49 = vadd.f32 %v734_v47, %v645_v32  ;;  %v736_v7 = vpop.f32.mrb[3].mxu0 }
 0x277   : > { %vm812_vm7 = vcmp.gt.f32.partialorder %v809_v46, 0.0  ;;  %v815_v52 = vmul.f32 %v809_v46, %v775_v42  ;;  %v737_v53 = vadd.f32 %v736_v7, %v645_v32 }
 0x278   : > { %v779_v55 = vsel %vm772_vm6, %v769_v45, %v776_v4  ;;  %v770_v56 = vadd.f32 %v767_v48, %v735_v49 }
 0x279   : > { %782 = vst [vmem:[%s1322_s14] sm:$0xff] %v779_v55  ;;  %v818_v57 = vsel %vm812_vm7, %v809_v46, %v815_v52  ;;  %v810_v58 = vadd.f32 %v807_v51, %v737_v53  ;;  %v740_v59 = vpop.f32.mrb[4].mxu0 }
 0x27a   : > { %920 = vst [vmem:[%s1322_s14 + $0x18] sm:$0xff] %v818_v57  ;;  %vm773_vm8 = vcmp.gt.f32.partialorder %v770_v56, 0.0  ;;  %v777_v61 = vmul.f32 %v775_v42, %v770_v56  ;;  %v741_v62 = vadd.f32 %v740_v59, %v650_v33  ;;  %v742_v63 = vpop.f32.mrb[5].mxu0 }
 0x27b   : > { %vm813_vm9 = vcmp.gt.f32.partialorder %v810_v58, 0.0  ;;  %v816_v0 = vmul.f32 %v810_v58, %v775_v42  ;;  %v743_v2 = vadd.f32 %v742_v63, %v650_v33 }
 0x27c   : > { %v780_v3 = vsel %vm773_vm8, %v770_v56, %v777_v61  ;;  %v771_v6 = vadd.f32 %v768_v60, %v741_v62 }
 0x27d   : > { %783 = vst [vmem:[%s1322_s14 + $0x8] sm:$0xff] %v780_v3  ;;  %v819_v9 = vsel %vm813_vm9, %v810_v58, %v816_v0  ;;  %v811_v10 = vadd.f32 %v808_v8, %v743_v2 }
 0x27e   : > { %921 = vst [vmem:[%s1322_s14 + $0x20] sm:$0xff] %v819_v9  ;;  %vm774_vm10 = vcmp.gt.f32.partialorder %v771_v6, 0.0  ;;  %v778_v11 = vmul.f32 %v775_v42, %v771_v6 }
 0x27f   : > { %vm814_vm11 = vcmp.gt.f32.partialorder %v811_v10, 0.0  ;;  %v817_v12 = vmul.f32 %v811_v10, %v775_v42 }
 0x280   : > { %v781_v13 = vsel %vm774_vm10, %v771_v6, %v778_v11 }
 0x281   : > { %784 = vst [vmem:[%s1322_s14 + $0x10] sm:$0xf] %v781_v13  ;;  %v820_v14 = vsel %vm814_vm11, %v811_v10, %v817_v12 }
 0x282   : > { %922 = vst [vmem:[%s1322_s14 + $0x28] sm:$0xf] %v820_v14 }
 0x283 PF: > { %s18_s24 = sadd.s32 1, %s1114_s24  }
 0x284   : > { %p15_p1 = scmp.ge.s32.totalorder %s18_s24, 4  }
 0x286   :  { %17 = sbr.rel (!%p15_p1) target bundleno = 1 (0x1), region = 85 }
 0x28d   :  { %849 = vsyncpa [#allocation4], 1 }
 0x28e   :  { %851 = vsyncpa [#allocation4 + $0x1], 1 }

</bundles_post_ra>
